<compile_context>
chip_gen: v6e
topology: v6e:2x2x1
jax: 0.10.0
libtpu: 0.0.40
codegen_flags: <defaults>
</compile_context>

<pallas_src>
import functools

import jax
import jax.numpy as jnp
from jax import lax
from jax.experimental import pallas as pl
from jax.experimental.pallas import tpu as pltpu

EPS = 1e-6  # F.pairwise_distance default eps (added to the difference)


def _contrastive_loss_kernel(o1_ref, o2_ref, label_ref, out_ref, acc_ref,
                             *, margin, total_rows, tile_rows):
    i = pl.program_id(0)

    @pl.when(i == 0)
    def _init():
        acc_ref[...] = jnp.zeros_like(acc_ref)

    o1 = o1_ref[...].astype(jnp.float32)            # (TB, D)
    o2 = o2_ref[...].astype(jnp.float32)            # (TB, D)
    lbl = label_ref[...].astype(jnp.float32)        # (TB, 1)

    # pairwise_distance: ||o1 - o2 + eps||_2 along last dim, keepdim=True
    diff = o1 - o2 + EPS
    sq_sum = jnp.sum(diff * diff, axis=-1, keepdims=True)   # (TB, 1) == dist^2
    dist = jnp.sqrt(sq_sum)                                  # (TB, 1)

    hinge = jnp.maximum(jnp.float32(margin) - dist, 0.0)
    # positive term reuses sq_sum directly (dist*dist == sq_sum exactly)
    per_row = lbl * sq_sum + (1.0 - lbl) * (hinge * hinge)   # (TB, 1)

    if total_rows % tile_rows != 0:
        # Mask padded rows of the ragged last tile (out-of-bounds block reads).
        row_ids = i * tile_rows + lax.broadcasted_iota(
            jnp.int32, per_row.shape, 0)
        per_row = jnp.where(row_ids < total_rows, per_row, 0.0)

    acc_ref[...] += per_row

    @pl.when(i == pl.num_programs(0) - 1)
    def _finalize():
        total = jnp.sum(acc_ref[...], keepdims=True)         # (1, 1)
        out_ref[...] = total * jnp.float32(1.0 / total_rows)


def _pick_tile_rows(batch, feat_dim, itemsize):
    # Keep 2 inputs x 2 pipeline buffers x tile well under the 32 MiB scoped
    # VMEM limit we request (safe on v5e / v6e / v7x): ~4 MiB per input tile.
    target_tile_bytes = 4 * 1024 * 1024
    tb = target_tile_bytes // max(1, feat_dim * itemsize)
    tb = min(batch, max(8, tb))
    if tb < batch:
        tb = max(8, (tb // 8) * 8)   # sublane alignment for partial blocks
    return tb


def contrastive_loss(output1, output2, label, *, margin=2.0, tile_rows=None):
    B, D = output1.shape
    label = label.reshape(B, 1)

    itemsize = jnp.dtype(output1.dtype).itemsize
    tb = tile_rows if tile_rows is not None else _pick_tile_rows(B, D, itemsize)
    tb = min(tb, B)
    num_tiles = pl.cdiv(B, tb)

    kernel = functools.partial(
        _contrastive_loss_kernel,
        margin=float(margin), total_rows=B, tile_rows=tb)

    out = pl.pallas_call(
        kernel,
        out_shape=jax.ShapeDtypeStruct((1, 1), jnp.float32),
        grid_spec=pltpu.PrefetchScalarGridSpec(
            num_scalar_prefetch=0,
            grid=(num_tiles,),
            in_specs=[
                pl.BlockSpec((tb, D), lambda i: (i, 0)),
                pl.BlockSpec((tb, D), lambda i: (i, 0)),
                pl.BlockSpec((tb, 1), lambda i: (i, 0)),
            ],
            # Accumulator-style output: constant block index across the grid,
            # written exactly once at the last iteration.
            out_specs=pl.BlockSpec((1, 1), lambda i: (0, 0)),
            scratch_shapes=[pltpu.VMEM((tb, 1), jnp.float32)],
        ),
        compiler_params=pltpu.CompilerParams(
            dimension_semantics=("arbitrary",),
            vmem_limit_bytes=32 * 1024 * 1024,
        ),
    )(output1, output2, label)
    return out[0, 0]


def _reference(output1, output2, label, margin=2.0):
    # Pure-JAX reference mirroring the PyTorch module.
    diff = output1.astype(jnp.float32) - output2.astype(jnp.float32) + EPS
    dist = jnp.sqrt(jnp.sum(diff * diff, axis=-1, keepdims=True))
    lbl = label.reshape(-1, 1).astype(jnp.float32)
    return jnp.mean(lbl * dist**2 + (1.0 - lbl) * jnp.clip(margin - dist, 0.0) ** 2)


if __name__ == "__main__":
    key = jax.random.PRNGKey(0)
    k1, k2, k3, k4, k5, k6 = jax.random.split(key, 6)

    # Small case from the module spec: single tile.
    B, D = 8, 32
    output1 = jax.random.normal(k1, (B, D), dtype=jnp.float32)
    output2 = jax.random.normal(k2, (B, D), dtype=jnp.float32)
    label = jax.random.bernoulli(k3, 0.5, (B, 1)).astype(jnp.float32)

    loss = jax.block_until_ready(contrastive_loss(output1, output2, label))
    ref = _reference(output1, output2, label)
    assert jnp.allclose(loss, ref, rtol=1e-5, atol=1e-5), (loss, ref)

    # Multi-tile + ragged-last-tile path (forced small tile to exercise the
    # streaming accumulation and row masking).
    B2, D2 = 50, 32
    o1b = jax.random.normal(k4, (B2, D2), dtype=jnp.float32)
    o2b = jax.random.normal(k5, (B2, D2), dtype=jnp.float32)
    lblb = jax.random.bernoulli(k6, 0.5, (B2, 1)).astype(jnp.float32)

    loss2 = jax.block_until_ready(
        contrastive_loss(o1b, o2b, lblb, margin=2.0, tile_rows=8))
    ref2 = _reference(o1b, o2b, lblb)
    assert jnp.allclose(loss2, ref2, rtol=1e-5, atol=1e-5), (loss2, ref2)

    print("KERNEL_OK")
</pallas_src>

<mosaic_0001>
module attributes {stable_mosaic.version = 11 : i64} {
  func.func @_contrastive_loss_kernel(%arg0: i32, %arg1: memref<8x32xf32, #tpu.memory_space<vmem>>, %arg2: memref<8x32xf32, #tpu.memory_space<vmem>>, %arg3: memref<8x1xf32, #tpu.memory_space<vmem>>, %arg4: memref<1x1xf32, #tpu.memory_space<vmem>>, %arg5: memref<8x1xf32, #tpu.memory_space<vmem>>) attributes {dimension_semantics = [#tpu.dimension_semantics<arbitrary>], iteration_bounds = array<i64: 1>, scalar_prefetch = 0 : i64, scratch_operands = 1 : i64, tpu.core_type = #tpu.core_type<tc>, window_params = [{transform_indices = @transform_0, window_bounds = array<i64: 8, 32>}, {transform_indices = @transform_1, window_bounds = array<i64: 8, 32>}, {transform_indices = @transform_2, window_bounds = array<i64: 8, 1>}, {pipeline_mode = #tpu.pipeline_mode<synchronous>, transform_indices = @transform_3, window_bounds = array<i64: 1, 1>}]} {
    %c0_i32 = arith.constant 0 : i32
    %0 = arith.cmpi eq, %arg0, %c0_i32 : i32
    %1 = arith.extui %0 : i1 to i32
    %c0_i32_0 = arith.constant 0 : i32
    %2 = arith.cmpi ne, %1, %c0_i32_0 : i32
    scf.if %2 {
      %cst_16 = arith.constant 0.000000e+00 : f32
      %29 = vector.broadcast %cst_16 : f32 to vector<8x1xf32>
      %c0_17 = arith.constant 0 : index
      %c0_18 = arith.constant 0 : index
      %30 = vector.load %arg5[%c0_17, %c0_18] : memref<8x1xf32, #tpu.memory_space<vmem>>, vector<8x1xf32>
      tpu.vector_store %arg5[%c0_17, %c0_18], %29 {strides = array<i32>} : memref<8x1xf32, #tpu.memory_space<vmem>>, vector<8x1xf32>,
    } else {
    }
    %c0 = arith.constant 0 : index
    %c0_1 = arith.constant 0 : index
    %3 = vector.load %arg1[%c0, %c0_1] : memref<8x32xf32, #tpu.memory_space<vmem>>, vector<8x32xf32>
    %c0_2 = arith.constant 0 : index
    %c0_3 = arith.constant 0 : index
    %4 = vector.load %arg2[%c0_2, %c0_3] : memref<8x32xf32, #tpu.memory_space<vmem>>, vector<8x32xf32>
    %c0_4 = arith.constant 0 : index
    %c0_5 = arith.constant 0 : index
    %5 = vector.load %arg3[%c0_4, %c0_5] : memref<8x1xf32, #tpu.memory_space<vmem>>, vector<8x1xf32>
    %6 = arith.subf %3, %4 : vector<8x32xf32>
    %cst = arith.constant 9.99999997E-7 : f32
    %7 = vector.broadcast %cst : f32 to vector<8x32xf32>
    %8 = arith.addf %6, %7 : vector<8x32xf32>
    %9 = arith.mulf %8, %8 : vector<8x32xf32>
    %cst_6 = arith.constant dense<0.000000e+00> : vector<8xf32>
    %10 = vector.multi_reduction <add>, %9, %cst_6 [1] : vector<8x32xf32> to vector<8xf32>
    %11 = vector.shape_cast %10 : vector<8xf32> to vector<8x1xf32>
    %12 = math.sqrt %11 : vector<8x1xf32>
    %cst_7 = arith.constant 2.000000e+00 : f32
    %13 = vector.broadcast %cst_7 : f32 to vector<8x1xf32>
    %14 = arith.subf %13, %12 : vector<8x1xf32>
    %cst_8 = arith.constant 0.000000e+00 : f32
    %15 = vector.broadcast %cst_8 : f32 to vector<8x1xf32>
    %16 = arith.maximumf %14, %15 : vector<8x1xf32>
    %17 = arith.mulf %5, %11 : vector<8x1xf32>
    %cst_9 = arith.constant 1.000000e+00 : f32
    %18 = vector.broadcast %cst_9 : f32 to vector<8x1xf32>
    %19 = arith.subf %18, %5 : vector<8x1xf32>
    %20 = arith.mulf %16, %16 : vector<8x1xf32>
    %21 = arith.mulf %19, %20 : vector<8x1xf32>
    %22 = arith.addf %17, %21 : vector<8x1xf32>
    %c0_10 = arith.constant 0 : index
    %c0_11 = arith.constant 0 : index
    %23 = vector.load %arg5[%c0_10, %c0_11] : memref<8x1xf32, #tpu.memory_space<vmem>>, vector<8x1xf32>
    %24 = arith.addf %23, %22 : vector<8x1xf32>
    %c0_12 = arith.constant 0 : index
    %c0_13 = arith.constant 0 : index
    %25 = vector.load %arg5[%c0_12, %c0_13] : memref<8x1xf32, #tpu.memory_space<vmem>>, vector<8x1xf32>
    tpu.vector_store %arg5[%c0_12, %c0_13], %24 {strides = array<i32>} : memref<8x1xf32, #tpu.memory_space<vmem>>, vector<8x1xf32>,
    %c0_i32_14 = arith.constant 0 : i32
    %26 = arith.cmpi eq, %arg0, %c0_i32_14 : i32
    %27 = arith.extui %26 : i1 to i32
    %c0_i32_15 = arith.constant 0 : i32
    %28 = arith.cmpi ne, %27, %c0_i32_15 : i32
    scf.if %28 {
      %c0_16 = arith.constant 0 : index
      %c0_17 = arith.constant 0 : index
      %29 = vector.load %arg5[%c0_16, %c0_17] : memref<8x1xf32, #tpu.memory_space<vmem>>, vector<8x1xf32>
      %30 = vector.shape_cast %29 : vector<8x1xf32> to vector<1x8x1xf32>
      %cst_18 = arith.constant dense<0.000000e+00> : vector<1xf32>
      %31 = vector.multi_reduction <add>, %30, %cst_18 [1, 2] : vector<1x8x1xf32> to vector<1xf32>
      %32 = vector.shape_cast %31 : vector<1xf32> to vector<1x1x1xf32>
      %33 = vector.extract %32[0, 0, 0] : f32 from vector<1x1x1xf32>
      %34 = vector.broadcast %33 : f32 to vector<1x1xf32>
      %cst_19 = arith.constant 1.250000e-01 : f32
      %35 = vector.broadcast %cst_19 : f32 to vector<1x1xf32>
      %36 = arith.mulf %34, %35 : vector<1x1xf32>
      %c0_20 = arith.constant 0 : index
      %c0_21 = arith.constant 0 : index
      %37 = vector.load %arg4[%c0_20, %c0_21] : memref<1x1xf32, #tpu.memory_space<vmem>>, vector<1x1xf32>
      tpu.vector_store %arg4[%c0_20, %c0_21], %36 {strides = array<i32>} : memref<1x1xf32, #tpu.memory_space<vmem>>, vector<1x1xf32>,
    } else {
    }
    return
  }
  func.func @transform_0(%arg0: i32) -> (i32, i32) {
    %c0_i32 = arith.constant 0 : i32
    %c0_i32_0 = arith.constant 0 : i32
    return %arg0, %c0_i32 : i32, i32
  }
  func.func @transform_1(%arg0: i32) -> (i32, i32) {
    %c0_i32 = arith.constant 0 : i32
    %c0_i32_0 = arith.constant 0 : i32
    return %arg0, %c0_i32 : i32, i32
  }
  func.func @transform_2(%arg0: i32) -> (i32, i32) {
    %c0_i32 = arith.constant 0 : i32
    %c0_i32_0 = arith.constant 0 : i32
    return %arg0, %c0_i32 : i32, i32
  }
  func.func @transform_3(%arg0: i32) -> (i32, i32) {
    %c0_i32 = arith.constant 0 : i32
    %c0_i32_0 = arith.constant 0 : i32
    %c0_i32_1 = arith.constant 0 : i32
    return %c0_i32, %c0_i32_0 : i32, i32
  }
}

</mosaic_0001>

<bundles_post_ra>
// kernel: tpu_custom_call.1
= control target key start
LH: loop header
LB: loop body
LE: loop exit
PB: predicated region body
PF: predicated region fallthrough
CT: control target
= control target key end

     0   :  { %8 = vsyncpa [#allocation4], 0  ;;  %s183_s0 = inlined_call_operand.vmem [shape: f32[8,32], index: 0, kind: input, shape index: {}]   ;;  %s184_s1 = inlined_call_operand.hbm [shape: f32[8,32], index: 1, kind: input, shape index: {}]   ;;  %s185_s2 = inlined_call_operand.vmem [shape: f32[8,1], index: 2, kind: input, shape index: {}]   ;;  %s186_s3 = inlined_call_operand.hbm [shape: f32[1,1], index: 3, kind: output, shape index: {}]  }
   0x1   :  { %9 = vsyncpa [#allocation5], 0  ;;  %s145_s12 = smov [#allocation3]  }
   0x2   :  { %s18_s13 = sshll.u32 %s145_s12, 4  ;;  %s19_s13 = int_to_ptr.vmem [resolvable:$true] %s18_s13 }
   0x3   :  { %s109_s14 = scalar_lea.vmem %s19_s13, 128  ;;  %p114_p1 = scmp.lt.s32.totalorder %s19_s13, %s19_s13 }
   0x4   :  { %p110_p0 = scmp.ne.s32.totalorder %s19_s13, %s109_s14  ;;  %p115_p2 = scmp.lt.s32.totalorder %s109_s14, %s109_s14 }
   0x6   :  { %p116_p3 = por %p115_p2, %p114_p1 }
   0x8   :  { %p117_p4 = pnand %p116_p3, %p110_p0 }
   0xa   :  { %120 = shalt.err (!%p117_p4)
}
   0xb   :  { %21 = dma.hbm_to_vmem [thread:$0]  %s184_s1, 128, %s19_s13, [#allocation4]  }
   0xc   :  { %141 = dma.done.wait [#allocation4], 128  }
   0xd   :  { %142 = vsyncadd [#allocation4], 4294967168  ;;  %v33_v0 = vld [vmem:[%s183_s0] sm:$0xff]  ;;  %v34_v1 = vld [vmem:[#allocation3] sm:$0xff]  ;;  %vm39_vm0 = vcmask 261120   ;;  %vm31_vm1 = vcmask 7168  }
   0xe   :  { %v36_v2 = vsub.f32 %v33_v0, %v34_v1  ;;  %v146_v6 = vmov 0.0   ;;  %v35_v14 = vld [vmem:[%s185_s2] sm:$0xff]  ;;  %s147_s2 = smov [#allocation6]   ;;  %vm77_vm4 = vcmask 0  }
   0xf   :  { %32 = vst.msk [vmem:[#allocation2] sm:$0xff] %vm31_vm1, %v146_v6  ;;  %v53_v15 = vsub.f32 1.0, %v35_v14  ;;  %s85_s19 = sshll.u32 %s147_s2, 4  ;;  %s86_s19 = int_to_ptr.vmem [resolvable:$true] %s85_s19 }
  0x10   :  { %v37_v3 = vadd.f32 1e-06, %v36_v2  ;;  %s121_s21 = scalar_lea.vmem %s86_s19, 16  ;;  %s125_s22 = scalar_lea.vmem %s86_s19, 32 }
  0x11   :  { %p122_p5 = scmp.ne.s32.totalorder %s86_s19, %s121_s21  ;;  %p126_p6 = scmp.lt.s32.totalorder %s86_s19, %s86_s19 }
  0x12   :  { %v38_v4 = vmul.f32 %v37_v3, %v37_v3  ;;  %p127_p7 = scmp.lt.s32.totalorder %s125_s22, %s121_s21 }
  0x14   :  { %v40_v5 = vsel %vm39_vm0, %v38_v4, 0.0  ;;  %p128_p8 = por %p127_p7, %p126_p6 }
  0x15   :  { %41 = vadd.xlane.f32.xlu0 %v40_v5 }
  0x16   :  { %v57_v20 = vld [vmem:[#allocation2] sm:$0xff]  ;;  %p129_p9 = pnand %p128_p8, %p122_p5 }
  0x9e   :  { %v42_v7 = vpop.xlane.xlu0 %41 }
  0x9f   :  { %99 = vrsqrt.f32 %v42_v7  ;;  %vm45_vm2 = vcmp.eq.f32.partialorder %v42_v7, inf  ;;  %v48_v10 = vand.u32 2147483648, %v42_v7  ;;  %vm47_vm3 = vcmp.eq.f32.partialorder %v42_v7, 0.0 }
  0xa0   :  { %v52_v18 = vmul.f32 %v42_v7, %v35_v14 }
  0xac   :  { %v100_v8 = vpop.eup %99 }
  0xad   :  { %v44_v9 = vmul.f32 %v100_v8, %v42_v7 }
  0xaf   :  { %v46_v11 = vsel %vm45_vm2, %v42_v7, %v44_v9 }
  0xb0   :  { %v49_v12 = vsel %vm47_vm3, %v48_v10, %v46_v11 }
  0xb1   :  { %v50_v13 = vsub.f32 2.0, %v49_v12 }
  0xb3   :  { %v51_v16 = vmax.f32 %v50_v13, 0.0 }
  0xb5   :  { %v54_v17 = vmul.f32 %v51_v16, %v51_v16 }
  0xb7   :  { %v55_v19 = vmul.f32 %v54_v17, %v53_v15 }
  0xb9   :  { %v56_v21 = vadd.f32 %v55_v19, %v52_v18 }
  0xbb   :  { %v58_v22 = vadd.f32 %v57_v20, %v56_v21 }
  0xbd   :  { %60 = vst.msk [vmem:[#allocation2] sm:$0xff] %vm31_vm1, %v58_v22 }
  0xc4   :  { %v64_v23 = vld [vmem:[#allocation2] sm:$0xff] }
  0xc5   :  { %v65_v24 = vsel %vm31_vm1, %v64_v23, 0.0 }
  0xc6   :  { %66 = vadd.xlane.f32.xlu0 %v65_v24 }
 0x14f   :  { %v67_v25 = vpop.xlane.xlu0 %66 }
 0x150   :  { %v68_v26 = vrot.slane %v67_v25, 4 }
 0x152   :  { %v69_v27 = vadd.f32 %v68_v26, %v67_v25 }
 0x154   :  { %v70_v28 = vrot.slane %v69_v27, 2 }
 0x156   :  { %v71_v29 = vadd.f32 %v70_v28, %v69_v27 }
 0x158   :  { %v72_v30 = vrot.slane %v71_v29, 1 }
 0x15a   :  { %v73_v31 = vadd.f32 %v72_v30, %v71_v29 }
 0x15c   :  { %94 = vpush %v73_v31 }
 0x18d   :  { %s95_s20 = spop %94 }
 0x18e   :  { %v75_v32 = vstv %s95_s20 }
 0x18f   :  { %v76_v33 = vmul.f32 0.125, %v75_v32 }
 0x191   :  { %78 = vst.msk [vmem:[#allocation6] sm:$0x1] %vm77_vm4, %v76_v33 }
 0x192   :  { %132 = shalt.err (!%p129_p9)
}
 0x193   :  { %88 = dma.vmem_to_hbm [thread:$0]  %s86_s19, 16, %s186_s3, [#allocation5]  }
 0x194   :  { %143 = dma.done.wait [#allocation5], 16  }
 0x195   :  { %144 = vsyncadd [#allocation5], 4294967280 }
 0x196   :  { %92 = vsyncpa [#allocation4], 1 }
 0x197   :  { %93 = vsyncpa [#allocation5], 1 }

</bundles_post_ra>
